<compile_context>
chip_gen: v7x
topology: tpu7x:2x2x1
jax: 0.10.0
libtpu: 0.0.40
codegen_flags: <defaults>
</compile_context>

<pallas_src>
import jax
import jax.numpy as jnp
from jax.experimental import pallas as pl
from jax.experimental.pallas import tpu as pltpu

DROPOUT_P = 0.4      # nn.Dropout(0.4)
DROPOUT2D_P = 0.2    # nn.Dropout2d(0.2)

_EL_THRESH = int(DROPOUT_P * 2**32)      # drop element if hash < thresh
_CH_THRESH = int(DROPOUT2D_P * 2**32)    # drop whole (n,c) plane if hash < thresh
_EL_SCALE = 1.0 / (1.0 - DROPOUT_P)
_CH_SCALE = 1.0 / (1.0 - DROPOUT2D_P)


def _round_up(x, m):
    return (x + m - 1) // m * m


def _mix32(v, seed):
    """Cheap 32-bit finalizer-style hash (lowbias32) of uint32 counter + seed."""
    h = v * jnp.uint32(0x9E3779B9) + seed
    h = h ^ (h >> 16)
    h = h * jnp.uint32(0x7FEB352D)
    h = h ^ (h >> 15)
    h = h * jnp.uint32(0x846CA68B)
    h = h ^ (h >> 16)
    return h


def mixdropout_kernel(mode_ref, seed_ref, x_ref, o_ref):
    """mode_ref, seed_ref: (1,) int32 scalar-prefetch (SMEM).
    x_ref / o_ref: (TILE_R, HW_pad) tile in VMEM."""
    tile_rows, hw = x_ref.shape
    row_off = (pl.program_id(0) * tile_rows).astype(jnp.uint32)
    seed = seed_ref[0].astype(jnp.uint32)
    x = x_ref[...]

    # --- branch A: elementwise dropout, p = 0.4 ---------------------------
    @pl.when(mode_ref[0] == 0)
    def _elementwise_dropout():
        rows = jax.lax.broadcasted_iota(jnp.uint32, (tile_rows, hw), 0)
        cols = jax.lax.broadcasted_iota(jnp.uint32, (tile_rows, hw), 1)
        gid = (rows + row_off) * jnp.uint32(hw) + cols          # global elem id
        keep = _mix32(gid, seed) >= jnp.uint32(_EL_THRESH)
        o_ref[...] = jnp.where(keep, x * _EL_SCALE, 0.0).astype(o_ref.dtype)

    # --- branch B: Dropout2d, p = 0.2 (drop whole (H,W) plane per (n,c)) --
    @pl.when(mode_ref[0] != 0)
    def _channel_dropout():
        rows = jax.lax.broadcasted_iota(jnp.uint32, (tile_rows, 1), 0) + row_off
        keep = _mix32(rows, seed ^ jnp.uint32(0x6A09E667)) >= jnp.uint32(_CH_THRESH)
        o_ref[...] = jnp.where(keep, x * _CH_SCALE, 0.0).astype(o_ref.dtype)


def _choose_tile_rows(nc, hw_pad, itemsize, target_bytes=2 * 1024 * 1024):
    """Pick a row-tile (multiple of 8) so one buffer is ~target_bytes; with
    double-buffered in+out that stays well under the scoped VMEM limit on
    every chip (incl. v7x's 64 MiB physical / 32 MiB default scoped VMEM)."""
    rows = (target_bytes // (hw_pad * itemsize)) // 8 * 8
    rows = max(8, int(rows))
    return int(min(rows, _round_up(nc, 8)))


def mix_dropout(x_nchw, *, key, training=True):
    """JAX/Pallas equivalent of MixDropout.forward."""
    if not training:
        return x_nchw

    n, c, h, w = x_nchw.shape
    nc, hw = n * c, h * w
    dtype = x_nchw.dtype
    itemsize = jnp.dtype(dtype).itemsize

    hw_pad = _round_up(hw, 128)                  # lane-dense (unmasked vst)
    tile_r = _choose_tile_rows(nc, hw_pad, itemsize)
    nc_pad = _round_up(nc, tile_r)

    x2d = x_nchw.reshape(nc, hw)
    if (nc_pad, hw_pad) != (nc, hw):
        x2d = jnp.pad(x2d, ((0, nc_pad - nc), (0, hw_pad - hw)))

    # random.random() < 0.5  ->  elementwise dropout (mode 0), else Dropout2d.
    k_mode, k_seed = jax.random.split(key)
    mode = jax.random.bernoulli(k_mode, 0.5).astype(jnp.int32).reshape(1)
    seed = jax.random.randint(k_seed, (1,), 0, 2**31 - 1, dtype=jnp.int32)

    grid = (nc_pad // tile_r,)
    out2d = pl.pallas_call(
        mixdropout_kernel,
        out_shape=jax.ShapeDtypeStruct((nc_pad, hw_pad), dtype),
        grid_spec=pltpu.PrefetchScalarGridSpec(
            num_scalar_prefetch=2,               # mode, seed -> SMEM
            grid=grid,
            in_specs=[pl.BlockSpec((tile_r, hw_pad),
                                   lambda i, mode, seed: (i, 0))],
            out_specs=pl.BlockSpec((tile_r, hw_pad),
                                   lambda i, mode, seed: (i, 0)),
        ),
        compiler_params=pltpu.CompilerParams(
            dimension_semantics=("parallel",),   # shard tiles across v7x's 2 TCs
            vmem_limit_bytes=32 * 1024 * 1024,
        ),
    )(mode, seed, x2d)

    if (nc_pad, hw_pad) != (nc, hw):
        out2d = out2d[:nc, :hw]
    return out2d.reshape(n, c, h, w)


if __name__ == "__main__":
    key = jax.random.PRNGKey(0)
    k_x, k_drop = jax.random.split(key)

    # Small NCHW input consistent with the module's forward.
    x = jax.random.normal(k_x, (2, 4, 16, 16), dtype=jnp.float32)

    y = mix_dropout(x, key=k_drop, training=True)
    jax.block_until_ready(y)

    assert y.shape == x.shape and y.dtype == x.dtype
    # Eval mode is identity.
    assert bool(jnp.all(mix_dropout(x, key=k_drop, training=False) == x))
    print("KERNEL_OK")
</pallas_src>

<mosaic_0001>
module attributes {stable_mosaic.version = 11 : i64} {
  func.func @mixdropout_kernel(%arg0: i32, %arg1: memref<1xi32, #tpu.memory_space<smem>>, %arg2: memref<1xi32, #tpu.memory_space<smem>>, %arg3: memref<8x256xf32, #tpu.memory_space<vmem>>, %arg4: memref<8x256xf32, #tpu.memory_space<vmem>>) attributes {dimension_semantics = [#tpu.dimension_semantics<parallel>], iteration_bounds = array<i64: 1>, scalar_prefetch = 2 : i64, scratch_operands = 0 : i64, tpu.core_type = #tpu.core_type<tc>, window_params = [{transform_indices = @transform_0, window_bounds = array<i64: 8, 256>}, {transform_indices = @transform_1, window_bounds = array<i64: 8, 256>}]} {
    %c8_i32 = arith.constant 8 : i32
    %0 = arith.muli %arg0, %c8_i32 : i32
    %c0 = arith.constant 0 : index
    %1 = memref.load %arg2[%c0] : memref<1xi32, #tpu.memory_space<smem>>
    %c0_0 = arith.constant 0 : index
    %c0_1 = arith.constant 0 : index
    %2 = vector.load %arg3[%c0_0, %c0_1] : memref<8x256xf32, #tpu.memory_space<vmem>>, vector<8x256xf32>
    %c0_2 = arith.constant 0 : index
    %3 = memref.load %arg1[%c0_2] : memref<1xi32, #tpu.memory_space<smem>>
    %c0_i32 = arith.constant 0 : i32
    %4 = arith.cmpi eq, %3, %c0_i32 : i32
    %5 = arith.extui %4 : i1 to i32
    %c0_i32_3 = arith.constant 0 : i32
    %6 = arith.cmpi ne, %5, %c0_i32_3 : i32
    scf.if %6 {
      %11 = tpu.iota {dimensions = array<i32: 0>} : vector<8x256xi32>
      %12 = tpu.iota {dimensions = array<i32: 1>} : vector<8x256xi32>
      %13 = vector.broadcast %0 : i32 to vector<8x256xi32>
      %14 = arith.addi %11, %13 : vector<8x256xi32>
      %c256_i32 = arith.constant 256 : i32
      %15 = vector.broadcast %c256_i32 : i32 to vector<8x256xi32>
      %16 = arith.muli %14, %15 : vector<8x256xi32>
      %17 = arith.addi %16, %12 : vector<8x256xi32>
      %c-1640531527_i32 = arith.constant -1640531527 : i32
      %18 = vector.broadcast %c-1640531527_i32 : i32 to vector<8x256xi32>
      %19 = arith.muli %17, %18 : vector<8x256xi32>
      %20 = vector.broadcast %1 : i32 to vector<8x256xi32>
      %21 = arith.addi %19, %20 : vector<8x256xi32>
      %c16_i32 = arith.constant 16 : i32
      %22 = vector.broadcast %c16_i32 : i32 to vector<8x256xi32>
      %23 = arith.shrui %21, %22 : vector<8x256xi32>
      %24 = arith.xori %21, %23 : vector<8x256xi32>
      %c2146121005_i32 = arith.constant 2146121005 : i32
      %25 = vector.broadcast %c2146121005_i32 : i32 to vector<8x256xi32>
      %26 = arith.muli %24, %25 : vector<8x256xi32>
      %c15_i32 = arith.constant 15 : i32
      %27 = vector.broadcast %c15_i32 : i32 to vector<8x256xi32>
      %28 = arith.shrui %26, %27 : vector<8x256xi32>
      %29 = arith.xori %26, %28 : vector<8x256xi32>
      %c-2073254261_i32 = arith.constant -2073254261 : i32
      %30 = vector.broadcast %c-2073254261_i32 : i32 to vector<8x256xi32>
      %31 = arith.muli %29, %30 : vector<8x256xi32>
      %c16_i32_7 = arith.constant 16 : i32
      %32 = vector.broadcast %c16_i32_7 : i32 to vector<8x256xi32>
      %33 = arith.shrui %31, %32 : vector<8x256xi32>
      %34 = arith.xori %31, %33 : vector<8x256xi32>
      %c1717986918_i32 = arith.constant 1717986918 : i32
      %35 = vector.broadcast %c1717986918_i32 : i32 to vector<8x256xi32>
      %36 = arith.cmpi uge, %34, %35 : vector<8x256xi32>
      %cst = arith.constant 1.66666663 : f32
      %37 = vector.broadcast %cst : f32 to vector<8x256xf32>
      %38 = arith.mulf %2, %37 : vector<8x256xf32>
      %cst_8 = arith.constant 0.000000e+00 : f32
      %39 = vector.broadcast %cst_8 : f32 to vector<8x256xf32>
      %40 = arith.select %36, %38, %39 : vector<8x256xi1>, vector<8x256xf32>
      %c0_9 = arith.constant 0 : index
      %c0_10 = arith.constant 0 : index
      %41 = vector.load %arg4[%c0_9, %c0_10] : memref<8x256xf32, #tpu.memory_space<vmem>>, vector<8x256xf32>
      tpu.vector_store %arg4[%c0_9, %c0_10], %40 {strides = array<i32>} : memref<8x256xf32, #tpu.memory_space<vmem>>, vector<8x256xf32>,
    } else {
    }
    %c0_4 = arith.constant 0 : index
    %7 = memref.load %arg1[%c0_4] : memref<1xi32, #tpu.memory_space<smem>>
    %c0_i32_5 = arith.constant 0 : i32
    %8 = arith.cmpi ne, %7, %c0_i32_5 : i32
    %9 = arith.extui %8 : i1 to i32
    %c0_i32_6 = arith.constant 0 : i32
    %10 = arith.cmpi ne, %9, %c0_i32_6 : i32
    scf.if %10 {
      %11 = tpu.iota {dimensions = array<i32: 0>} : vector<8x1xi32>
      %12 = vector.broadcast %0 : i32 to vector<8x1xi32>
      %13 = arith.addi %11, %12 : vector<8x1xi32>
      %c1779033703_i32 = arith.constant 1779033703 : i32
      %14 = arith.xori %1, %c1779033703_i32 : i32
      %c-1640531527_i32 = arith.constant -1640531527 : i32
      %15 = vector.broadcast %c-1640531527_i32 : i32 to vector<8x1xi32>
      %16 = arith.muli %13, %15 : vector<8x1xi32>
      %17 = vector.broadcast %14 : i32 to vector<8x1xi32>
      %18 = arith.addi %16, %17 : vector<8x1xi32>
      %c16_i32 = arith.constant 16 : i32
      %19 = vector.broadcast %c16_i32 : i32 to vector<8x1xi32>
      %20 = arith.shrui %18, %19 : vector<8x1xi32>
      %21 = arith.xori %18, %20 : vector<8x1xi32>
      %c2146121005_i32 = arith.constant 2146121005 : i32
      %22 = vector.broadcast %c2146121005_i32 : i32 to vector<8x1xi32>
      %23 = arith.muli %21, %22 : vector<8x1xi32>
      %c15_i32 = arith.constant 15 : i32
      %24 = vector.broadcast %c15_i32 : i32 to vector<8x1xi32>
      %25 = arith.shrui %23, %24 : vector<8x1xi32>
      %26 = arith.xori %23, %25 : vector<8x1xi32>
      %c-2073254261_i32 = arith.constant -2073254261 : i32
      %27 = vector.broadcast %c-2073254261_i32 : i32 to vector<8x1xi32>
      %28 = arith.muli %26, %27 : vector<8x1xi32>
      %c16_i32_7 = arith.constant 16 : i32
      %29 = vector.broadcast %c16_i32_7 : i32 to vector<8x1xi32>
      %30 = arith.shrui %28, %29 : vector<8x1xi32>
      %31 = arith.xori %28, %30 : vector<8x1xi32>
      %c858993459_i32 = arith.constant 858993459 : i32
      %32 = vector.broadcast %c858993459_i32 : i32 to vector<8x1xi32>
      %33 = arith.cmpi uge, %31, %32 : vector<8x1xi32>
      %cst = arith.constant 1.250000e+00 : f32
      %34 = vector.broadcast %cst : f32 to vector<8x256xf32>
      %35 = arith.mulf %2, %34 : vector<8x256xf32>
      %cst_8 = arith.constant 0.000000e+00 : f32
      %36 = vector.shape_cast %33 : vector<8x1xi1> to vector<8x1xi1>
      %37 = vector.broadcast %36 : vector<8x1xi1> to vector<8x256xi1>
      %38 = vector.broadcast %cst_8 : f32 to vector<8x256xf32>
      %39 = arith.select %37, %35, %38 : vector<8x256xi1>, vector<8x256xf32>
      %c0_9 = arith.constant 0 : index
      %c0_10 = arith.constant 0 : index
      %40 = vector.load %arg4[%c0_9, %c0_10] : memref<8x256xf32, #tpu.memory_space<vmem>>, vector<8x256xf32>
      tpu.vector_store %arg4[%c0_9, %c0_10], %39 {strides = array<i32>} : memref<8x256xf32, #tpu.memory_space<vmem>>, vector<8x256xf32>,
    } else {
    }
    return
  }
  func.func @transform_0(%arg0: i32, %arg1: memref<1xi32, #tpu.memory_space<smem>>, %arg2: memref<1xi32, #tpu.memory_space<smem>>) -> (i32, i32) {
    %c0_i32 = arith.constant 0 : i32
    %c0_i32_0 = arith.constant 0 : i32
    return %arg0, %c0_i32 : i32, i32
  }
  func.func @transform_1(%arg0: i32, %arg1: memref<1xi32, #tpu.memory_space<smem>>, %arg2: memref<1xi32, #tpu.memory_space<smem>>) -> (i32, i32) {
    %c0_i32 = arith.constant 0 : i32
    %c0_i32_0 = arith.constant 0 : i32
    return %arg0, %c0_i32 : i32, i32
  }
}

</mosaic_0001>

<bundles_post_ra>
// kernel: tpu_custom_call.1
= control target key start
LH: loop header
LB: loop body
LE: loop exit
PB: predicated region body
PF: predicated region fallthrough
CT: control target
= control target key end

     0   :  { %s225_s0 = inlined_call_operand.<no memory space> [shape: s32[1], index: 0, kind: input, shape index: {}]   ;;  %s226_s1 = inlined_call_operand.<no memory space> [shape: s32[1], index: 1, kind: input, shape index: {}]   ;;  %s227_s2 = inlined_call_operand.hbm [shape: f32[8,256], index: 2, kind: input, shape index: {}]   ;;  %s228_s3 = inlined_call_operand.hbm [shape: f32[8,256], index: 3, kind: output, shape index: {}]  }
   0x1   :  { %8 = sst [smem:[#allocation3]] %s225_s0 }
   0x2   :  { %10 = vsyncpa [#allocation6], 0 }
   0x3   :  { %11 = vsyncpa [#allocation7], 0  ;;  %s170_s14 = smov [#allocation5]   ;;  %s122_s18 = scalar_lea.hbm %s227_s2, 256 }
   0x4   :  { %s18_s15 = sshll.u32 %s170_s14, 4  ;;  %p123_p0 = scmp.ne.s32.totalorder %s227_s2, %s122_s18  ;;  %s19_s15 = int_to_ptr.vmem [resolvable:$true] %s18_s15 }
   0x5   :  { %p126_p1 = scmp.lt.u32.totalorder %s122_s18, %s227_s2 }
   0x7   :  { %p128_p2 = pnand %p126_p1, %p123_p0 }
   0x9   :  { %131 = shalt.err (!%p128_p2)
}
   0xa   :  { %s132_s0 = scalar_lea.vmem %s19_s15, 256  ;;  %p137_p4 = scmp.lt.s32.totalorder %s19_s15, %s19_s15 }
   0xb   :  { %p133_p3 = scmp.ne.s32.totalorder %s19_s15, %s132_s0  ;;  %p138_p5 = scmp.lt.s32.totalorder %s132_s0, %s132_s0 }
   0xd   :  { %p139_p6 = por %p138_p5, %p137_p4 }
   0xf   :  { %p140_p7 = pnand %p139_p6, %p133_p3 }
  0x11   :  { %143 = shalt.err (!%p140_p7)
}
  0x12   :  { %21 = dma.hbm_to_vmem [thread:$0]  %s227_s2, 256, %s19_s15, [#allocation6]  }
  0x13   :  { %166 = dma.done.wait [#allocation6], 256  }
  0x14   :  { %167 = vsyncadd [#allocation6], 4294967040  ;;  %s29_s25 = sld [smem:[#allocation3]]  ;;  %v27_v0 = vld [vmem:[#allocation5] sm:$0xff]  ;;  %v28_v1 = vld [vmem:[#allocation5 + $0x8] sm:$0xff] }
  0x1a   :  { %p118_p8 = scmp.ne.s32.totalorder %s29_s25, 0 }
  0x1b   :  { %v34_v2 = vlaneseq (!%p118_p8)  ;;  %v46_v9 = vstv (!%p118_p8), %s226_s1  ;;  %v67_v28 = vmul.f32 (!%p118_p8), 1.6666666, %v27_v0  ;;  %v68_v29 = vmul.f32 (!%p118_p8), 1.6666666, %v28_v1 }
  0x1c   :  { %33 = sbr.rel (%p118_p8) target bundleno = 58 (0x3a), region = 13 }
  0x1d   :  { %v35_v3 = vshrl.u32 (!%p118_p8), %v34_v2, 7  ;;  %v37_v4 = vand.u32 (!%p118_p8), 127, %v34_v2 }
  0x1f   :  { %v41_v5 = vmul.u32 (!%p118_p8), 256, %v35_v3  ;;  %v38_v6 = vadd.s32 (!%p118_p8), 128, %v37_v4 }
  0x21   :  { %v42_v7 = vadd.s32 (!%p118_p8), %v41_v5, %v37_v4  ;;  %v43_v8 = vadd.s32 (!%p118_p8), %v41_v5, %v38_v6 }
  0x23   :  { %v44_v10 = vmul.u32 2654435769, %v42_v7  ;;  %v45_v11 = vmul.u32 2654435769, %v43_v8 }
  0x25   :  { %v47_v12 = vadd.s32 %v46_v9, %v44_v10  ;;  %v48_v13 = vadd.s32 %v46_v9, %v45_v11 }
  0x27   :  { %v49_v14 = vshrl.u32 %v47_v12, 16  ;;  %v50_v15 = vshrl.u32 %v48_v13, 16 }
  0x29   :  { %v51_v16 = vxor.u32 %v49_v14, %v47_v12  ;;  %v52_v17 = vxor.u32 %v50_v15, %v48_v13 }
  0x2b   :  { %v53_v18 = vmul.u32 2146121005, %v51_v16  ;;  %v54_v19 = vmul.u32 2146121005, %v52_v17 }
  0x2d   :  { %v55_v20 = vshrl.u32 %v53_v18, 15  ;;  %v56_v21 = vshrl.u32 %v54_v19, 15 }
  0x2f   :  { %v57_v22 = vxor.u32 %v55_v20, %v53_v18  ;;  %v58_v23 = vxor.u32 %v56_v21, %v54_v19 }
  0x31   :  { %v59_v24 = vmul.u32 2221713035, %v57_v22  ;;  %v60_v25 = vmul.u32 2221713035, %v58_v23 }
  0x33   :  { %v61_v26 = vshrl.u32 %v59_v24, 16  ;;  %v62_v27 = vshrl.u32 %v60_v25, 16 }
  0x35   :  { %v63_v30 = vxor.u32 %v61_v26, %v59_v24  ;;  %v64_v31 = vxor.u32 %v62_v27, %v60_v25 }
  0x37   :  { %vm65_vm0 = vcmp.ge.u32.totalorder %v63_v30, 1717986918  ;;  %vm66_vm1 = vcmp.ge.u32.totalorder %v64_v31, 1717986918 }
  0x38   :  { %v69_v32 = vsel %vm65_vm0, %v67_v28, 0.0  ;;  %v70_v33 = vsel %vm66_vm1, %v68_v29, 0.0 }
  0x39   :  { %71 = vst [vmem:[#allocation8] sm:$0xff] %v69_v32  ;;  %72 = vst [vmem:[#allocation8 + $0x8] sm:$0xff] %v70_v33 }
  0x3a PF:  { %s73_s2 = sld [smem:[#allocation3]] }
  0x40   :  { %p119_p9 = scmp.eq.s32.totalorder %s73_s2, 0 }
  0x41   :  { %v78_v34 = vlaneseq (!%p119_p9)  ;;  %s82_s30 = sxor.u32 (!%p119_p9), 1779033703, %s226_s1  ;;  %v95_v46 = vmul.f32 (!%p119_p9), 1.25, %v27_v0  ;;  %v96_v47 = vmul.f32 (!%p119_p9), 1.25, %v28_v1 }
  0x42   :  { %77 = sbr.rel (%p119_p9) target bundleno = 92 (0x5c), region = 17  ;;  %v84_v36 = vstv (!%p119_p9), %s82_s30 }
  0x43   :  { %v79_v35 = vshrl.u32 (!%p119_p9), %v78_v34, 7 }
  0x45   :  { %v83_v37 = vmul.u32 (!%p119_p9), 2654435769, %v79_v35 }
  0x47   :  { %v85_v38 = vadd.s32 (!%p119_p9), %v84_v36, %v83_v37 }
  0x49   :  { %v86_v39 = vshrl.u32 %v85_v38, 16 }
  0x4b   :  { %v87_v40 = vxor.u32 %v86_v39, %v85_v38 }
  0x4d   :  { %v88_v41 = vmul.u32 2146121005, %v87_v40 }
  0x4f   :  { %v89_v42 = vshrl.u32 %v88_v41, 15 }
  0x51   :  { %v90_v43 = vxor.u32 %v89_v42, %v88_v41 }
  0x53   :  { %v91_v44 = vmul.u32 2221713035, %v90_v43 }
  0x55   :  { %v92_v45 = vshrl.u32 %v91_v44, 16 }
  0x57   :  { %v93_v48 = vxor.u32 %v92_v45, %v91_v44 }
  0x59   :  { %vm94_vm2 = vcmp.ge.u32.totalorder %v93_v48, 858993459 }
  0x5a   :  { %v99_v49 = vsel %vm94_vm2, %v95_v46, 0.0  ;;  %v100_v50 = vsel %vm94_vm2, %v96_v47, 0.0 }
  0x5b   :  { %101 = vst [vmem:[#allocation8] sm:$0xff] %v99_v49  ;;  %102 = vst [vmem:[#allocation8 + $0x8] sm:$0xff] %v100_v50 }
  0x5c PF:  { %s171_s1 = smov [#allocation8]  }
  0x5d   :  { %s109_s4 = sshll.u32 %s171_s1, 4  ;;  %s110_s4 = int_to_ptr.vmem [resolvable:$true] %s109_s4 }
  0x5e   :  { %s144_s5 = scalar_lea.vmem %s110_s4, 256  ;;  %p149_p11 = scmp.lt.s32.totalorder %s110_s4, %s110_s4 }
  0x5f   :  { %p145_p10 = scmp.ne.s32.totalorder %s110_s4, %s144_s5  ;;  %p150_p12 = scmp.lt.s32.totalorder %s144_s5, %s144_s5 }
  0x61   :  { %p151_p13 = por %p150_p12, %p149_p11 }
  0x63   :  { %p152_p0 = pnand %p151_p13, %p145_p10 }
  0x65   :  { %155 = shalt.err (!%p152_p0)
}
  0x66   :  { %s156_s8 = scalar_lea.hbm %s228_s3, 256 }
  0x67   :  { %p157_p1 = scmp.ne.s32.totalorder %s228_s3, %s156_s8  ;;  %p160_p2 = scmp.lt.u32.totalorder %s156_s8, %s228_s3 }
  0x69   :  { %p162_p3 = pnand %p160_p2, %p157_p1 }
  0x6b   :  { %165 = shalt.err (!%p162_p3)
}
  0x6c   :  { %112 = dma.vmem_to_hbm [thread:$0]  %s110_s4, 256, %s228_s3, [#allocation7]  }
  0x6d   :  { %168 = dma.done.wait [#allocation7], 256  }
  0x6e   :  { %169 = vsyncadd [#allocation7], 4294967040 }
  0x6f   :  { %116 = vsyncpa [#allocation6], 1 }
  0x70   :  { %117 = vsyncpa [#allocation7], 1 }

</bundles_post_ra>
